<compile_context>
chip_gen: v6e
topology: v6e:2x2x1
jax: 0.10.0
libtpu: 0.0.40
codegen_flags: <defaults>
</compile_context>

<pallas_src>
import functools

import jax
import jax.numpy as jnp
from jax import lax
from jax.experimental import pallas as pl
from jax.experimental.pallas import tpu as pltpu


def _round_up(x, m):
    return ((x + m - 1) // m) * m


def _cdiv(a, b):
    return (a + b - 1) // b


def _tensorcores_per_chip():
    """Best-effort TC-per-chip detection (v7x / v4 = 2, v5e / v6e = 1)."""
    try:
        kind = (jax.devices()[0].device_kind or "").lower()
    except Exception:
        return 1
    return 2 if ("v7" in kind or "v4" in kind) else 1


def _shallow_deep_kernel(num_hidden, eup_bf16,
                         x_ref, w0_ref, ws_ref, b_ref, wout_ref, o_ref):
    """One batch tile. Activations are kept transposed: (features, TB)."""

    def sigmoid(z):
        # single-transcendental sigmoid: one EUP tanh, no VPU divide
        if eup_bf16:
            # packed bf16 EUP (~2x rate on v6e/v7x); ~1e-2 accuracy
            t = jnp.tanh((0.5 * z).astype(jnp.bfloat16)).astype(jnp.float32)
        else:
            t = jnp.tanh(0.5 * z)
        return 0.5 * (t + 1.0)

    b = b_ref[...]                                 # (h_dim, 1+num_hidden), f32

    # First layer: bf16 MXU operands, f32 accumulate.  Batch operand consumed
    # transposed by the MXU: (h, in) x (TB, in)^T -> (h, TB).
    z0 = lax.dot_general(
        w0_ref[...], x_ref[...],
        dimension_numbers=(((1,), (1,)), ((), ())),
        preferred_element_type=jnp.float32,
    ) + b[:, 0:1]
    x0 = sigmoid(z0)                               # residual source, f32 (h, TB)
    h = x0

    # Hidden layers (self.list[1:-1] in the PyTorch module)
    for l in range(num_hidden):
        z = jnp.dot(ws_ref[l], h.astype(jnp.bfloat16),
                    preferred_element_type=jnp.float32)
        h = sigmoid(z + b[:, l + 1:l + 2])

    # Final bias-free projection of (h + x0): (out_dim, TB), lane-dense store.
    out_t = jnp.dot(wout_ref[...], (h + x0).astype(jnp.bfloat16),
                    preferred_element_type=jnp.float32)
    o_ref[...] = out_t.astype(o_ref.dtype)


def shallow_deep_ext_forward(x, params, *, block_b=4096, eup_bf16=False,
                             transpose_output=True):
    """params = (w0, b0, w1, b1, ..., w_out); weights stored (fan_in, fan_out),
    biases (1, fan_out) or (fan_out,); final layer is bias-free."""
    w_out = params[-1]
    num_hidden = (len(params) - 3) // 2
    B, in_dim = x.shape
    h_dim = params[0].shape[1]
    out_dim = w_out.shape[1]
    f32, bf16 = jnp.float32, jnp.bfloat16

    # ---- pack / pre-transpose the (tiny) parameters (bf16 MXU operands) -----
    w0_t = params[0].astype(bf16).T                                  # (h, in)
    if num_hidden > 0:
        ws_t = jnp.stack(
            [params[2 + 2 * i].astype(bf16).T for i in range(num_hidden)], 0)
    else:
        ws_t = jnp.zeros((1, h_dim, h_dim), bf16)                    # unused dummy
    bs_t = jnp.stack(
        [params[1 + 2 * i].astype(f32).reshape(h_dim)
         for i in range(num_hidden + 1)], axis=1)                    # (h, L) f32
    wout_t = w_out.astype(bf16).T                                    # (out, h)

    # ---- batch tiling: balanced tiles, bounded padding, >=2 tiles on 2-TC ---
    block_b = max(128, int(block_b))
    n_tc = _tensorcores_per_chip()
    num_tiles = _cdiv(B, block_b)
    if n_tc > 1 and B >= 256:
        num_tiles = _round_up(max(num_tiles, n_tc), n_tc)
    if num_tiles == 1:
        tb = _round_up(max(B, 16), 16)          # single full-extent tile
    else:
        tb = _round_up(_cdiv(B, num_tiles), 128)  # lane-aligned, balanced
    b_pad = num_tiles * tb

    x_pad = x.astype(bf16)
    if b_pad != B:
        x_pad = jnp.pad(x_pad, ((0, b_pad - B), (0, 0)))

    # advisory cost estimate for the XLA scheduler
    flops = 2 * b_pad * (in_dim * h_dim + num_hidden * h_dim * h_dim
                         + h_dim * out_dim)
    transcendentals = b_pad * h_dim * (num_hidden + 1)
    bytes_accessed = (2 * b_pad * in_dim + 4 * b_pad * out_dim
                      + 2 * (int(w0_t.size) + int(ws_t.size) + int(wout_t.size))
                      + 4 * int(bs_t.size))
    cost = pl.CostEstimate(flops=flops, transcendentals=transcendentals,
                           bytes_accessed=bytes_accessed)

    out_t = pl.pallas_call(
        functools.partial(_shallow_deep_kernel, num_hidden, eup_bf16),
        out_shape=jax.ShapeDtypeStruct((out_dim, b_pad), f32),
        grid=(num_tiles,),
        in_specs=[
            pl.BlockSpec((tb, in_dim), lambda i: (i, 0)),       # x: batch-tiled
            pl.BlockSpec(w0_t.shape, lambda i: (0, 0)),         # VMEM-resident
            pl.BlockSpec(ws_t.shape, lambda i: (0, 0, 0)),      # VMEM-resident
            pl.BlockSpec(bs_t.shape, lambda i: (0, 0)),         # VMEM-resident
            pl.BlockSpec(wout_t.shape, lambda i: (0, 0)),       # VMEM-resident
        ],
        out_specs=pl.BlockSpec((out_dim, tb), lambda i: (0, i)),  # lane-dense
        compiler_params=pltpu.CompilerParams(
            dimension_semantics=("parallel",)),
        cost_estimate=cost,
    )(x_pad, w0_t, ws_t, bs_t, wout_t)

    out_t = out_t[:, :B]                  # drop padded batch rows
    # (out_dim, B) -> (B, out_dim) to match the PyTorch module; pass
    # transpose_output=False to skip the extra XLA transpose pass.
    return out_t.T if transpose_output else out_t


def init_params(key, in_dim, h_dim, out_dim, layers=4):
    """Deterministic parameter init matching the module's layer shapes."""
    layer_list = [in_dim] + [h_dim] * layers + [out_dim]
    params = []
    keys = jax.random.split(key, len(layer_list))
    for i in range(1, len(layer_list)):
        fan_in, fan_out = layer_list[i - 1], layer_list[i]
        kw, kb = jax.random.split(keys[i - 1])
        scale = 1.0 / jnp.sqrt(jnp.float32(fan_in))
        if i == len(layer_list) - 1:
            # final layer: Linear(h_dim, out_dim, bias=False)
            w = jax.random.uniform(kw, (h_dim, out_dim), jnp.float32, -scale, scale)
            params.append(w)
        else:
            w = jax.random.uniform(kw, (fan_in, fan_out), jnp.float32, -scale, scale)
            b = jax.random.uniform(kb, (1, fan_out), jnp.float32, -scale, scale)
            params.append(w)
            params.append(b)
    return tuple(params)


def reference_forward(x, params):
    """Pure-JAX f32 reference mirroring the PyTorch forward (with_af=False)."""
    w_out = params[-1]
    sigmoid = lambda z: 1.0 / (1.0 + jnp.exp(-z))
    num_hidden = (len(params) - 3) // 2
    x0 = sigmoid(x @ params[0] + params[1].reshape(-1))
    h = x0
    for i in range(num_hidden):
        h = sigmoid(h @ params[2 + 2 * i] + params[3 + 2 * i].reshape(-1))
    return (h + x0) @ w_out


if __name__ == "__main__":
    in_dim, h_dim, out_dim, layers = 16, 32, 4, 4

    key = jax.random.PRNGKey(0)
    kx1, kx2, kp = jax.random.split(key, 3)
    params = init_params(kp, in_dim, h_dim, out_dim, layers=layers)

    # bf16 MXU operands vs f32 reference -> ~1e-3 abs error; tolerance 2e-2.
    TOL = 2e-2

    # 1) small batch (single tile on 1-TC chips, split on 2-TC chips)
    x1 = jax.random.normal(kx1, (64, in_dim), jnp.float32)
    out1 = jax.block_until_ready(shallow_deep_ext_forward(x1, params))
    ref1 = reference_forward(x1, params)
    assert out1.shape == (64, out_dim)
    assert jnp.allclose(out1, ref1, atol=TOL, rtol=TOL), "single-tile mismatch"

    # 2) multi-tile path with a ragged last tile (exercises balanced padding)
    x2 = jax.random.normal(kx2, (300, in_dim), jnp.float32)
    out2 = jax.block_until_ready(shallow_deep_ext_forward(x2, params, block_b=128))
    ref2 = reference_forward(x2, params)
    assert out2.shape == (300, out_dim)
    assert jnp.allclose(out2, ref2, atol=TOL, rtol=TOL), "multi-tile mismatch"

    # 3) kernel-native (out_dim, B) output path (no wrapper transpose)
    out3 = jax.block_until_ready(
        shallow_deep_ext_forward(x2, params, transpose_output=False))
    assert out3.shape == (out_dim, 300)
    assert jnp.allclose(out3.T, ref2, atol=TOL, rtol=TOL), "no-transpose mismatch"

    print("KERNEL_OK")
</pallas_src>

<mosaic_0001>
module attributes {stable_mosaic.version = 11 : i64} {
  func.func @_shallow_deep_kernel(%arg0: i32, %arg1: memref<64x16xbf16, #tpu.memory_space<vmem>>, %arg2: memref<32x16xbf16, #tpu.memory_space<vmem>>, %arg3: memref<3x32x32xbf16, #tpu.memory_space<vmem>>, %arg4: memref<32x4xf32, #tpu.memory_space<vmem>>, %arg5: memref<4x32xbf16, #tpu.memory_space<vmem>>, %arg6: memref<4x64xf32, #tpu.memory_space<vmem>>) attributes {dimension_semantics = [#tpu.dimension_semantics<parallel>], iteration_bounds = array<i64: 1>, scalar_prefetch = 0 : i64, scratch_operands = 0 : i64, tpu.core_type = #tpu.core_type<tc>, window_params = [{transform_indices = @transform_0, window_bounds = array<i64: 64, 16>}, {pipeline_mode = #tpu.pipeline_mode<synchronous>, transform_indices = @transform_1, window_bounds = array<i64: 32, 16>}, {pipeline_mode = #tpu.pipeline_mode<synchronous>, transform_indices = @transform_2, window_bounds = array<i64: 3, 32, 32>}, {pipeline_mode = #tpu.pipeline_mode<synchronous>, transform_indices = @transform_3, window_bounds = array<i64: 32, 4>}, {pipeline_mode = #tpu.pipeline_mode<synchronous>, transform_indices = @transform_4, window_bounds = array<i64: 4, 32>}, {transform_indices = @transform_5, window_bounds = array<i64: 4, 64>}]} {
    %c0 = arith.constant 0 : index
    %c0_0 = arith.constant 0 : index
    %0 = vector.load %arg4[%c0, %c0_0] : memref<32x4xf32, #tpu.memory_space<vmem>>, vector<32x4xf32>
    %c0_1 = arith.constant 0 : index
    %c0_2 = arith.constant 0 : index
    %1 = vector.load %arg2[%c0_1, %c0_2] : memref<32x16xbf16, #tpu.memory_space<vmem>>, vector<32x16xbf16>
    %c0_3 = arith.constant 0 : index
    %c0_4 = arith.constant 0 : index
    %2 = vector.load %arg1[%c0_3, %c0_4] : memref<64x16xbf16, #tpu.memory_space<vmem>>, vector<64x16xbf16>
    %cst = arith.constant dense<0.000000e+00> : vector<32x64xf32>
    %3 = tpu.matmul %1, %2, %cst {dimension_numbers = #tpu.dot_dimension_numbers<[1], [1], [0], [0], [0, 0, 1, 0], [], []>} : vector<32x16xbf16>, vector<64x16xbf16>, vector<32x64xf32> -> vector<32x64xf32>
    %4 = vector.extract_strided_slice %0 {offsets = [0, 0], sizes = [32, 1], strides = [1, 1]} : vector<32x4xf32> to vector<32x1xf32>
    %5 = vector.broadcast %4 : vector<32x1xf32> to vector<32x64xf32>
    %6 = arith.addf %3, %5 : vector<32x64xf32>
    %cst_5 = arith.constant 5.000000e-01 : f32
    %7 = vector.broadcast %cst_5 : f32 to vector<32x64xf32>
    %8 = arith.mulf %7, %6 : vector<32x64xf32>
    %9 = math.tanh %8 : vector<32x64xf32>
    %cst_6 = arith.constant 1.000000e+00 : f32
    %10 = vector.broadcast %cst_6 : f32 to vector<32x64xf32>
    %11 = arith.addf %9, %10 : vector<32x64xf32>
    %cst_7 = arith.constant 5.000000e-01 : f32
    %12 = vector.broadcast %cst_7 : f32 to vector<32x64xf32>
    %13 = arith.mulf %12, %11 : vector<32x64xf32>
    %c0_8 = arith.constant 0 : index
    %c0_9 = arith.constant 0 : index
    %c0_10 = arith.constant 0 : index
    %14 = vector.load %arg3[%c0_8, %c0_9, %c0_10] : memref<3x32x32xbf16, #tpu.memory_space<vmem>>, vector<1x32x32xbf16>
    %15 = vector.shape_cast %14 : vector<1x32x32xbf16> to vector<32x32xbf16>
    %16 = arith.truncf %13 : vector<32x64xf32> to vector<32x64xbf16>
    %cst_11 = arith.constant dense<0.000000e+00> : vector<32x64xf32>
    %17 = tpu.matmul %15, %16, %cst_11 {dimension_numbers = #tpu.dot_dimension_numbers<[1], [0], [0], [1], [0, 0, 1, 1], [], []>} : vector<32x32xbf16>, vector<32x64xbf16>, vector<32x64xf32> -> vector<32x64xf32>
    %18 = vector.extract_strided_slice %0 {offsets = [0, 1], sizes = [32, 1], strides = [1, 1]} : vector<32x4xf32> to vector<32x1xf32>
    %19 = vector.broadcast %18 : vector<32x1xf32> to vector<32x64xf32>
    %20 = arith.addf %17, %19 : vector<32x64xf32>
    %cst_12 = arith.constant 5.000000e-01 : f32
    %21 = vector.broadcast %cst_12 : f32 to vector<32x64xf32>
    %22 = arith.mulf %21, %20 : vector<32x64xf32>
    %23 = math.tanh %22 : vector<32x64xf32>
    %cst_13 = arith.constant 1.000000e+00 : f32
    %24 = vector.broadcast %cst_13 : f32 to vector<32x64xf32>
    %25 = arith.addf %23, %24 : vector<32x64xf32>
    %cst_14 = arith.constant 5.000000e-01 : f32
    %26 = vector.broadcast %cst_14 : f32 to vector<32x64xf32>
    %27 = arith.mulf %26, %25 : vector<32x64xf32>
    %c1 = arith.constant 1 : index
    %c0_15 = arith.constant 0 : index
    %c0_16 = arith.constant 0 : index
    %28 = vector.load %arg3[%c1, %c0_15, %c0_16] : memref<3x32x32xbf16, #tpu.memory_space<vmem>>, vector<1x32x32xbf16>
    %29 = vector.shape_cast %28 : vector<1x32x32xbf16> to vector<32x32xbf16>
    %30 = arith.truncf %27 : vector<32x64xf32> to vector<32x64xbf16>
    %cst_17 = arith.constant dense<0.000000e+00> : vector<32x64xf32>
    %31 = tpu.matmul %29, %30, %cst_17 {dimension_numbers = #tpu.dot_dimension_numbers<[1], [0], [0], [1], [0, 0, 1, 1], [], []>} : vector<32x32xbf16>, vector<32x64xbf16>, vector<32x64xf32> -> vector<32x64xf32>
    %32 = vector.extract_strided_slice %0 {offsets = [0, 2], sizes = [32, 1], strides = [1, 1]} : vector<32x4xf32> to vector<32x1xf32>
    %33 = vector.broadcast %32 : vector<32x1xf32> to vector<32x64xf32>
    %34 = arith.addf %31, %33 : vector<32x64xf32>
    %cst_18 = arith.constant 5.000000e-01 : f32
    %35 = vector.broadcast %cst_18 : f32 to vector<32x64xf32>
    %36 = arith.mulf %35, %34 : vector<32x64xf32>
    %37 = math.tanh %36 : vector<32x64xf32>
    %cst_19 = arith.constant 1.000000e+00 : f32
    %38 = vector.broadcast %cst_19 : f32 to vector<32x64xf32>
    %39 = arith.addf %37, %38 : vector<32x64xf32>
    %cst_20 = arith.constant 5.000000e-01 : f32
    %40 = vector.broadcast %cst_20 : f32 to vector<32x64xf32>
    %41 = arith.mulf %40, %39 : vector<32x64xf32>
    %c2 = arith.constant 2 : index
    %c0_21 = arith.constant 0 : index
    %c0_22 = arith.constant 0 : index
    %42 = vector.load %arg3[%c2, %c0_21, %c0_22] : memref<3x32x32xbf16, #tpu.memory_space<vmem>>, vector<1x32x32xbf16>
    %43 = vector.shape_cast %42 : vector<1x32x32xbf16> to vector<32x32xbf16>
    %44 = arith.truncf %41 : vector<32x64xf32> to vector<32x64xbf16>
    %cst_23 = arith.constant dense<0.000000e+00> : vector<32x64xf32>
    %45 = tpu.matmul %43, %44, %cst_23 {dimension_numbers = #tpu.dot_dimension_numbers<[1], [0], [0], [1], [0, 0, 1, 1], [], []>} : vector<32x32xbf16>, vector<32x64xbf16>, vector<32x64xf32> -> vector<32x64xf32>
    %46 = vector.extract_strided_slice %0 {offsets = [0, 3], sizes = [32, 1], strides = [1, 1]} : vector<32x4xf32> to vector<32x1xf32>
    %47 = vector.broadcast %46 : vector<32x1xf32> to vector<32x64xf32>
    %48 = arith.addf %45, %47 : vector<32x64xf32>
    %cst_24 = arith.constant 5.000000e-01 : f32
    %49 = vector.broadcast %cst_24 : f32 to vector<32x64xf32>
    %50 = arith.mulf %49, %48 : vector<32x64xf32>
    %51 = math.tanh %50 : vector<32x64xf32>
    %cst_25 = arith.constant 1.000000e+00 : f32
    %52 = vector.broadcast %cst_25 : f32 to vector<32x64xf32>
    %53 = arith.addf %51, %52 : vector<32x64xf32>
    %cst_26 = arith.constant 5.000000e-01 : f32
    %54 = vector.broadcast %cst_26 : f32 to vector<32x64xf32>
    %55 = arith.mulf %54, %53 : vector<32x64xf32>
    %c0_27 = arith.constant 0 : index
    %c0_28 = arith.constant 0 : index
    %56 = vector.load %arg5[%c0_27, %c0_28] : memref<4x32xbf16, #tpu.memory_space<vmem>>, vector<4x32xbf16>
    %57 = arith.addf %55, %13 : vector<32x64xf32>
    %58 = arith.truncf %57 : vector<32x64xf32> to vector<32x64xbf16>
    %cst_29 = arith.constant dense<0.000000e+00> : vector<4x64xf32>
    %59 = tpu.matmul %56, %58, %cst_29 {dimension_numbers = #tpu.dot_dimension_numbers<[1], [0], [0], [1], [0, 0, 1, 1], [], []>} : vector<4x32xbf16>, vector<32x64xbf16>, vector<4x64xf32> -> vector<4x64xf32>
    %c0_30 = arith.constant 0 : index
    %c0_31 = arith.constant 0 : index
    %60 = vector.load %arg6[%c0_30, %c0_31] : memref<4x64xf32, #tpu.memory_space<vmem>>, vector<4x64xf32>
    tpu.vector_store %arg6[%c0_30, %c0_31], %59 {strides = array<i32>} : memref<4x64xf32, #tpu.memory_space<vmem>>, vector<4x64xf32>,
    return
  }
  func.func @transform_0(%arg0: i32) -> (i32, i32) {
    %c0_i32 = arith.constant 0 : i32
    %c0_i32_0 = arith.constant 0 : i32
    return %arg0, %c0_i32 : i32, i32
  }
  func.func @transform_1(%arg0: i32) -> (i32, i32) {
    %c0_i32 = arith.constant 0 : i32
    %c0_i32_0 = arith.constant 0 : i32
    %c0_i32_1 = arith.constant 0 : i32
    return %c0_i32, %c0_i32_0 : i32, i32
  }
  func.func @transform_2(%arg0: i32) -> (i32, i32, i32) {
    %c0_i32 = arith.constant 0 : i32
    %c0_i32_0 = arith.constant 0 : i32
    %c0_i32_1 = arith.constant 0 : i32
    %c0_i32_2 = arith.constant 0 : i32
    return %c0_i32, %c0_i32_0, %c0_i32_1 : i32, i32, i32
  }
  func.func @transform_3(%arg0: i32) -> (i32, i32) {
    %c0_i32 = arith.constant 0 : i32
    %c0_i32_0 = arith.constant 0 : i32
    %c0_i32_1 = arith.constant 0 : i32
    return %c0_i32, %c0_i32_0 : i32, i32
  }
  func.func @transform_4(%arg0: i32) -> (i32, i32) {
    %c0_i32 = arith.constant 0 : i32
    %c0_i32_0 = arith.constant 0 : i32
    %c0_i32_1 = arith.constant 0 : i32
    return %c0_i32, %c0_i32_0 : i32, i32
  }
  func.func @transform_5(%arg0: i32) -> (i32, i32) {
    %c0_i32 = arith.constant 0 : i32
    %c0_i32_0 = arith.constant 0 : i32
    return %c0_i32, %arg0 : i32, i32
  }
}

</mosaic_0001>

<bundles_post_ra>
// kernel: tpu_custom_call.1
= control target key start
LH: loop header
LB: loop body
LE: loop exit
PB: predicated region body
PF: predicated region fallthrough
CT: control target
= control target key end

     0   :  { %vm88_vm0 = vcmask 130048   ;;  %v729_v3 = vmov 0   ;;  %s877_s0 = inlined_call_operand.vmem [shape: bf16[64,16], index: 0, kind: input, shape index: {}]   ;;  %s878_s1 = inlined_call_operand.vmem [shape: bf16[32,16], index: 1, kind: input, shape index: {}]   ;;  %s879_s2 = inlined_call_operand.vmem [shape: bf16[3,32,32], index: 2, kind: input, shape index: {}]   ;;  %s880_s3 = inlined_call_operand.vmem [shape: f32[32,4], index: 3, kind: input, shape index: {}]   ;;  %s881_s4 = inlined_call_operand.vmem [shape: bf16[4,32], index: 4, kind: input, shape index: {}]   ;;  %s882_s5 = inlined_call_operand.hbm [shape: f32[4,64], index: 5, kind: output, shape index: {}]  }
   0x1   :  { %v663_v0 = vld [vmem:[%s877_s0 + $0x18] sm:$0xff]   ;;  %v664_v1 = vld [vmem:[%s877_s0 + $0x10] sm:$0xff]   ;;  %655 = vset.pattern.permute.xlu0 %v729_v3  ;;  %656 = vset.pattern.permute.xlu1 %v729_v3  ;;  %v667_v4 = vld [vmem:[%s878_s1] sm:$0xff]  }
   0x2   :  { %644 = vmatprep.subr.msk.bf16.mxu0 %vm88_vm0, %v663_v0  ;;  %v105_v2 = vsel %vm88_vm0, %v663_v0, 0  ;;  %v665_v5 = vld [vmem:[%s877_s0 + $0x8] sm:$0xff]   ;;  %608 = vmatprep.mubr.msk.bf16.mxu0 %vm88_vm0, %v667_v4  ;;  %v785_v6 = vld [vmem:[%s880_s3 + $0x10] sm:$0xff]  ;;  %v790_v7 = vld [vmem:[%s880_s3 + $0x18] sm:$0xff]  ;;  %v102_v9 = vsel %vm88_vm0, %v664_v1, 0 }
   0x3   :  { %601 = vmatpush3.bf16.xpose.msra.mxu0 %v105_v2  ;;  %v795_v8 = vld [vmem:[%s880_s3] sm:$0xff]  ;;  %50 = vperm.xlu0 %655, %v785_v6   ;;  %v803_v10 = vld [vmem:[%s880_s3 + $0x8] sm:$0xff] }
   0x4   :  { %645 = vmatprep.subr.msk.bf16.mxu0 %vm88_vm0, %v664_v1  ;;  %40 = vperm.xlu1 %656, %v795_v8  }
   0x7   :  { %55 = vperm.xlu0 %655, %v790_v7  }
   0xb   :  { %603 = vmatpush3.bf16.xpose.msra.mxu0 %v102_v9 }
   0xc   :  { %10 = vsyncpa [#allocation3], 0  ;;  %646 = vmatprep.subr.msk.bf16.mxu0 %vm88_vm0, %v665_v5  ;;  %45 = vperm.xlu1 %656, %v803_v10   ;;  %v99_v11 = vsel %vm88_vm0, %v665_v5, 0  ;;  %v666_v12 = vld [vmem:[%s877_s0] sm:$0xff]   ;;  %v668_v14 = vld [vmem:[%s878_s1 + $0x8] sm:$0xff]   ;;  %vm204_vm1 = vcmask 261120  }
   0xd   :  { %v96_v13 = vsel %vm88_vm0, %v666_v12, 0  ;;  %v669_v15 = vld [vmem:[%s879_s2] sm:$0xff]   ;;  %v730_v16 = vmov 1   ;;  %v670_v47 = vld [vmem:[%s879_s2 + $0x8] sm:$0xff]   ;;  %v671_v48 = vld [vmem:[%s879_s2 + $0x10] sm:$0xff]   ;;  %v731_v49 = vmov 2  }
   0xe   :  { %616 = vmatprep.mubr.msk.bf16.mxu1 %vm204_vm1, %v669_v15  ;;  %657 = vset.pattern.permute.xlu0 %v730_v16  ;;  %vm734_vm2 = vmmov 0   ;;  %s735_s23 = smov [#allocation2]   ;;  %vm534_vm3 = vcmask 519168  }
   0xf   :  { %187 = vperm.xlu0 %657, %v785_v6   ;;  %s542_s24 = sshll.u32 %s735_s23, 4  ;;  %s543_s24 = int_to_ptr.vmem [resolvable:$true] %s542_s24 }
  0x10   :  { %658 = vset.pattern.permute.xlu1 %v730_v16  ;;  %s707_s25 = scalar_lea.vmem %s543_s24, 64  ;;  %p712_p1 = scmp.lt.s32.totalorder %s543_s24, %s543_s24 }
  0x11   :  { %191 = vperm.xlu1 %658, %v790_v7   ;;  %p708_p0 = scmp.ne.s32.totalorder %s543_s24, %s707_s25  ;;  %p713_p2 = scmp.lt.s32.totalorder %s707_s25, %s707_s25 }
  0x13   :  { %605 = vmatpush3.bf16.xpose.msra.mxu0 %v99_v11  ;;  %183 = vperm.xlu0 %657, %v803_v10   ;;  %p714_p3 = por %p713_p2, %p712_p1 }
  0x14   :  { %647 = vmatprep.subr.msk.bf16.mxu0 %vm88_vm0, %v666_v12 }
  0x15   :  { %179 = vperm.xlu1 %658, %v795_v8   ;;  %p715_p4 = pnand %p714_p3, %p708_p0 }
  0x17   :  { %660 = vset.pattern.permute.xlu0 %v731_v49 }
  0x18   :  { %296 = vperm.xlu0 %660, %v790_v7  }
  0x19   :  { %659 = vset.pattern.permute.xlu1 %v731_v49 }
  0x1a   :  { %292 = vperm.xlu1 %659, %v785_v6  }
  0x1b   :  { %607 = vmatpush3.bf16.xpose.msra.mxu0 %v96_v13 }
  0x1e   :  { %284 = vperm.xlu1 %659, %v795_v8  }
  0x22   :  { %609 = vmatmul.mubr.msk.bf16.vlgmr.msra.gmra.mxu0 %vm88_vm0, %v668_v14  ;;  %288 = vperm.xlu1 %659, %v803_v10  }
  0x7e   :  { %v51_v17 = vpop.permute.xlu0 %50 }
  0x7f   :  { %v41_v19 = vpop.permute.xlu1 %40 }
  0x82   :  { %v56_v24 = vpop.permute.xlu0 %55 }
  0x87   :  { %v46_v28 = vpop.permute.xlu1 %45 }
  0x8a   :  { %v188_v51 = vpop.permute.xlu0 %187 }
  0x8c   :  { %v192_v50 = vpop.permute.xlu1 %191 }
  0x8e   :  { %v184_v61 = vpop.permute.xlu0 %183 }
  0x90   :  { %v180_v53 = vpop.permute.xlu1 %179 }
  0xe2   :  { %v610_v18 = vpop.f32.mrf.mxu0 }
  0xe3   :  { %v150_v20 = vadd.f32 %v610_v18, %v51_v17 }
  0xe4   :  { %v141_v21 = vpop.f32.mrf.mxu0 }
  0xe5   :  { %v158_v22 = vmul.f32 0.5, %v150_v20  ;;  %v142_v23 = vadd.f32 %v141_v21, %v41_v19  ;;  %v672_v20 = vld [vmem:[%s879_s2 + $0x18] sm:$0xff]   ;;  %v673_v21 = vld [vmem:[%s879_s2 + $0x20] sm:$0xff]  }
  0xe6   :  { %v611_v25 = vpop.f32.mrf.mxu0 }
  0xe7   :  { %675 = vtanh.f32 %v158_v22  ;;  %v156_v26 = vmul.f32 0.5, %v142_v23  ;;  %v153_v27 = vadd.f32 %v611_v25, %v56_v24  ;;  %v732_v22 = vmov 3   ;;  %v293_v23 = vpop.permute.xlu1 %292 }
  0xe8   :  { %v144_v29 = vpop.f32.mrf.mxu0  ;;  %662 = vset.pattern.permute.xlu1 %v732_v22  ;;  %661 = vset.pattern.permute.xlu0 %v732_v22 }
  0xe9   :  { %677 = vtanh.f32 %v156_v26  ;;  %v159_v30 = vmul.f32 0.5, %v153_v27  ;;  %v145_v31 = vadd.f32 %v144_v29, %v46_v28  ;;  %400 = vperm.xlu1 %662, %v790_v7   ;;  %396 = vperm.xlu0 %661, %v785_v6   ;;  %v297_v28 = vpop.permute.xlu0 %296 }
  0xeb   :  { %679 = vtanh.f32 %v159_v30  ;;  %v157_v32 = vmul.f32 0.5, %v145_v31  ;;  %v285_v24 = vpop.permute.xlu1 %284 }
  0xed   :  { %681 = vtanh.f32 %v157_v32  ;;  %388 = vperm.xlu1 %662, %v795_v8   ;;  %392 = vperm.xlu0 %661, %v803_v10  }
  0xf4   :  { %v676_v33 = vpop.eup %675 }
  0xf5   :  { %v166_v35 = vadd.f32 1.0, %v676_v33 }
  0xf6   :  { %v678_v34 = vpop.eup %677 }
  0xf7   :  { %v164_v37 = vadd.f32 1.0, %v678_v34  ;;  %v826_v41 = vmul.f32 0.5, %v166_v35  ;;  %v289_v34 = vpop.permute.xlu1 %288 }
  0xf8   :  { %v680_v36 = vpop.eup %679 }
  0xf9   :  { %v167_v38 = vadd.f32 1.0, %v680_v36  ;;  %v830_v43 = vmul.f32 0.5, %v164_v37 }
  0xfa   :  { %v682_v39 = vpop.eup %681 }
  0xfb   :  { %v165_v40 = vadd.f32 1.0, %v682_v39  ;;  %v828_v42 = vmul.f32 0.5, %v167_v38 }
  0xfd   :  { %v832_v44 = vmul.f32 0.5, %v165_v40  ;;  %v177_v45 = vpack.c.bf16 %v828_v42, %v826_v41 }
  0xff   :  { %612 = vmatprep.subr.bf16.mxu1 %v177_v45  ;;  %v176_v46 = vpack.c.bf16 %v832_v44, %v830_v43 }
 0x100   :  { %613 = vmatpush3.bf16.msra.mxu1 %v177_v45 }
 0x101   :  { %614 = vmatprep.subr.bf16.mxu1 %v176_v46 }
 0x104   :  { %615 = vmatpush3.bf16.msra.mxu1 %v176_v46 }
 0x107   :  { %617 = vmatmul.mubr.msk.bf16.vlgmr.msra.gmra.mxu1 %vm204_vm1, %v670_v47 }
 0x108   :  { %624 = vmatprep.mubr.msk.bf16.mxu1 %vm204_vm1, %v671_v48 }
 0x1c7   :  { %v618_v52 = vpop.f32.mrf.mxu1 }
 0x1c8   :  { %v254_v54 = vadd.f32 %v618_v52, %v188_v51 }
 0x1c9   :  { %v245_v55 = vpop.f32.mrf.mxu1 }
 0x1ca   :  { %v262_v56 = vmul.f32 0.5, %v254_v54  ;;  %v246_v57 = vadd.f32 %v245_v55, %v180_v53  ;;  %v674_v53 = vld [vmem:[%s879_s2 + $0x28] sm:$0xff]   ;;  %v733_v54 = vmov 0.0   ;;  %v401_v55 = vpop.permute.xlu1 %400 }
 0x1cb   :  { %v619_v58 = vpop.f32.mrf.mxu1 }
 0x1cc   :  { %683 = vtanh.f32 %v262_v56  ;;  %v260_v59 = vmul.f32 0.5, %v246_v57  ;;  %v257_v60 = vadd.f32 %v619_v58, %v192_v50  ;;  %v397_v56 = vpop.permute.xlu0 %396 }
 0x1cd   :  { %v248_v62 = vpop.f32.mrf.mxu1 }
 0x1ce   :  { %685 = vtanh.f32 %v260_v59  ;;  %v263_v63 = vmul.f32 0.5, %v257_v60  ;;  %v249_v0 = vadd.f32 %v248_v62, %v184_v61  ;;  %v389_v58 = vpop.permute.xlu1 %388 }
 0x1d0   :  { %687 = vtanh.f32 %v263_v63  ;;  %v261_v1 = vmul.f32 0.5, %v249_v0 }
 0x1d2   :  { %689 = vtanh.f32 %v261_v1 }
 0x1d9   :  { %v684_v2 = vpop.eup %683 }
 0x1da   :  { %v270_v4 = vadd.f32 1.0, %v684_v2  ;;  %v393_v2 = vpop.permute.xlu0 %392 }
 0x1db   :  { %v686_v3 = vpop.eup %685 }
 0x1dc   :  { %v268_v9 = vadd.f32 1.0, %v686_v3  ;;  %v274_v13 = vmul.f32 0.5, %v270_v4 }
 0x1dd   :  { %v688_v5 = vpop.eup %687 }
 0x1de   :  { %v271_v11 = vadd.f32 1.0, %v688_v5  ;;  %v272_v16 = vmul.f32 0.5, %v268_v9 }
 0x1df   :  { %v690_v12 = vpop.eup %689 }
 0x1e0   :  { %v275_v14 = vmul.f32 0.5, %v271_v11  ;;  %v269_v15 = vadd.f32 1.0, %v690_v12 }
 0x1e2   :  { %v273_v17 = vmul.f32 0.5, %v269_v15  ;;  %v282_v18 = vpack.c.bf16 %v275_v14, %v274_v13 }
 0x1e4   :  { %620 = vmatprep.subr.bf16.mxu1 %v282_v18  ;;  %v281_v19 = vpack.c.bf16 %v273_v17, %v272_v16 }
 0x1e5   :  { %621 = vmatpush3.bf16.msra.mxu1 %v282_v18 }
 0x1e6   :  { %622 = vmatprep.subr.bf16.mxu1 %v281_v19 }
 0x1e9   :  { %623 = vmatpush3.bf16.msra.mxu1 %v281_v19 }
 0x1ec   :  { %625 = vmatmul.mubr.msk.bf16.vlgmr.msra.gmra.mxu1 %vm204_vm1, %v672_v20 }
 0x1ed   :  { %632 = vmatprep.mubr.msk.bf16.mxu1 %vm204_vm1, %v673_v21 }
 0x2ac   :  { %v626_v25 = vpop.f32.mrf.mxu1 }
 0x2ad   :  { %v358_v26 = vadd.f32 %v626_v25, %v293_v23 }
 0x2ae   :  { %v349_v27 = vpop.f32.mrf.mxu1 }
 0x2af   :  { %v366_v29 = vmul.f32 0.5, %v358_v26  ;;  %v350_v30 = vadd.f32 %v349_v27, %v285_v24 }
 0x2b0   :  { %v627_v31 = vpop.f32.mrf.mxu1 }
 0x2b1   :  { %691 = vtanh.f32 %v366_v29  ;;  %v364_v32 = vmul.f32 0.5, %v350_v30  ;;  %v361_v33 = vadd.f32 %v627_v31, %v297_v28  ;;  %v484_v29 = vld [vmem:[%s881_s4] sm:$0x3] }
 0x2b2   :  { %v352_v7 = vpop.f32.mrf.mxu1 }
 0x2b3   :  { %693 = vtanh.f32 %v364_v32  ;;  %v367_v6 = vmul.f32 0.5, %v361_v33  ;;  %v353_v35 = vadd.f32 %v352_v7, %v289_v34 }
 0x2b5   :  { %695 = vtanh.f32 %v367_v6  ;;  %v365_v8 = vmul.f32 0.5, %v353_v35 }
 0x2b7   :  { %697 = vtanh.f32 %v365_v8 }
 0x2be   :  { %v692_v10 = vpop.eup %691 }
 0x2bf   :  { %v374_v37 = vadd.f32 1.0, %v692_v10 }
 0x2c0   :  { %v694_v36 = vpop.eup %693 }
 0x2c1   :  { %v372_v39 = vadd.f32 1.0, %v694_v36  ;;  %v378_v46 = vmul.f32 0.5, %v374_v37 }
 0x2c2   :  { %v696_v38 = vpop.eup %695 }
 0x2c3   :  { %v375_v40 = vadd.f32 1.0, %v696_v38  ;;  %v376_v49 = vmul.f32 0.5, %v372_v39 }
 0x2c4   :  { %v698_v45 = vpop.eup %697 }
 0x2c5   :  { %v379_v47 = vmul.f32 0.5, %v375_v40  ;;  %v373_v48 = vadd.f32 1.0, %v698_v45 }
 0x2c7   :  { %v377_v50 = vmul.f32 0.5, %v373_v48  ;;  %v386_v51 = vpack.c.bf16 %v379_v47, %v378_v46 }
 0x2c9   :  { %628 = vmatprep.subr.bf16.mxu1 %v386_v51  ;;  %v385_v52 = vpack.c.bf16 %v377_v50, %v376_v49 }
 0x2ca   :  { %629 = vmatpush3.bf16.msra.mxu1 %v386_v51 }
 0x2cb   :  { %630 = vmatprep.subr.bf16.mxu1 %v385_v52 }
 0x2ce   :  { %631 = vmatpush3.bf16.msra.mxu1 %v385_v52 }
 0x2cf   :  { %636 = vmatprep.subr.bf16.mxu1 %v733_v54 }
 0x2d1   :  { %633 = vmatmul.mubr.msk.bf16.vlgmr.msra.gmra.mxu1 %vm204_vm1, %v674_v53 }
 0x2d2   :  { %640 = vmatprep.mubr.msk.bf16.mxu1 %vm734_vm2, %v733_v54 }
 0x391   :  { %v634_v57 = vpop.f32.mrf.mxu1 }
 0x392   :  { %v462_v59 = vadd.f32 %v634_v57, %v397_v56 }
 0x393   :  { %v453_v60 = vpop.f32.mrf.mxu1 }
 0x394   :  { %v470_v61 = vmul.f32 0.5, %v462_v59  ;;  %v454_v62 = vadd.f32 %v453_v60, %v389_v58 }
 0x395   :  { %v635_v63 = vpop.f32.mrf.mxu1 }
 0x396   :  { %699 = vtanh.f32 %v470_v61  ;;  %v468_v0 = vmul.f32 0.5, %v454_v62  ;;  %v465_v1 = vadd.f32 %v635_v63, %v401_v55 }
 0x397   :  { %v456_v3 = vpop.f32.mrf.mxu1 }
 0x398   :  { %701 = vtanh.f32 %v468_v0  ;;  %v471_v4 = vmul.f32 0.5, %v465_v1  ;;  %v457_v5 = vadd.f32 %v456_v3, %v393_v2 }
 0x39a   :  { %703 = vtanh.f32 %v471_v4  ;;  %v469_v9 = vmul.f32 0.5, %v457_v5 }
 0x39c   :  { %705 = vtanh.f32 %v469_v9 }
 0x3a3   :  { %v700_v11 = vpop.eup %699 }
 0x3a4   :  { %v478_v12 = vadd.f32 1.0, %v700_v11 }
 0x3a5   :  { %v702_v13 = vpop.eup %701 }
 0x3a6   :  { %v482_v15 = vmul.f32 0.5, %v478_v12  ;;  %v476_v16 = vadd.f32 1.0, %v702_v13 }
 0x3a7   :  { %v704_v14 = vpop.eup %703 }
 0x3a8   :  { %v479_v17 = vadd.f32 1.0, %v704_v14  ;;  %v487_v21 = vadd.f32 %v482_v15, %v826_v41  ;;  %v480_v22 = vmul.f32 0.5, %v476_v16 }
 0x3a9   :  { %v706_v18 = vpop.eup %705 }
 0x3aa   :  { %v483_v19 = vmul.f32 0.5, %v479_v17  ;;  %v477_v20 = vadd.f32 1.0, %v706_v18  ;;  %v485_v27 = vadd.f32 %v480_v22, %v830_v43 }
 0x3ac   :  { %v488_v23 = vadd.f32 %v483_v19, %v828_v42  ;;  %v481_v24 = vmul.f32 0.5, %v477_v20 }
 0x3ae   :  { %v486_v25 = vadd.f32 %v481_v24, %v832_v44  ;;  %v490_v26 = vpack.c.bf16 %v488_v23, %v487_v21 }
 0x3b0   :  { %637 = vmatpush3.bf16.msra.mxu1 %v490_v26  ;;  %v489_v28 = vpack.c.bf16 %v486_v25, %v485_v27 }
 0x3b1   :  { %638 = vmatprep.subr.bf16.mxu1 %v733_v54 }
 0x3b4   :  { %639 = vmatpush3.bf16.msra.mxu1 %v489_v28 }
 0x3b7   :  { %641 = vmatmul.mubr.msk.bf16.vlgmr.msra.gmra.mxu1 %vm204_vm1, %v484_v29 }
 0x477   :  { %v528_v41 = vpop.f32.mrf.mxu1 }
 0x478   :  { %535 = vst.msk [vmem:[#allocation2] sm:$0xf] %vm534_vm3, %v528_v41 }
 0x479   :  { %v642_v42 = vpop.f32.mrf.mxu1 }
 0x47a   :  { %718 = shalt.err (!%p715_p4)
}
 0x47b   :  { %545 = dma.vmem_to_hbm [thread:$0]  %s543_s24, 64, %s882_s5, [#allocation3]   ;;  %v531_v43 = vpop.f32.mrf.mxu1 }
 0x47d   :  { %v643_v44 = vpop.f32.mrf.mxu1 }
 0x47e   :  { %727 = dma.done.wait [#allocation3], 64  }
 0x47f   :  { %728 = vsyncadd [#allocation3], 4294967232 }
 0x480   :  { %549 = vsyncpa [#allocation3], 1 }

</bundles_post_ra>
